<compile_context>
chip_gen: v6e
topology: v6e:2x2x1
jax: 0.10.0
libtpu: 0.0.40
codegen_flags: <defaults>
</compile_context>

<pallas_src>
import jax
import jax.numpy as jnp
from jax.experimental import pallas as pl
from jax.experimental.pallas import tpu as pltpu

# Problem sizes from the PyTorch module.
D_IN = 1
H = 2
D_OUT = 1

# TPU-tile-friendly padded sizes (a single (8,128) tile of work).
B_PAD = 8
LANES = 128


def _mlp_kernel(x_ref, w1b1_ref, p2_ref, o_ref):
    # Layer 1: rank-1 broadcast multiply-add on the VPU, sigmoid on the EUP.
    x_col = x_ref[...]                          # (B_PAD, 1)
    w1_row = w1b1_ref[0:1, :]                   # (1, LANES), zeros beyond H
    b1_row = w1b1_ref[1:2, :]                   # (1, LANES), zeros beyond H
    a1 = jax.nn.sigmoid(x_col * w1_row + b1_row)  # (B_PAD, LANES)

    # Layer 2: 2-term multiply-add (H == 2) with scalar weights from SMEM.
    w20 = p2_ref[0]
    w21 = p2_ref[1]
    b2 = p2_ref[2]
    l2 = a1[:, 0:1] * w20 + a1[:, 1:2] * w21 + b2  # (B_PAD, 1)
    yhat = jax.nn.sigmoid(l2)

    # Lane-dense (unmasked) store; the wrapper slices out column 0.
    o_ref[...] = jnp.broadcast_to(yhat, (B_PAD, LANES))


@jax.jit
def net_forward(x, w1b1, p2):
    """x: (B, D_IN) f32; w1b1: (2, LANES) pre-packed; p2: (3,) = [w2_0, w2_1, b2]."""
    B = x.shape[0]
    # Only the activation needs per-call padding.
    x_p = jnp.zeros((B_PAD, 1), jnp.float32).at[:B, :].set(x)

    out_p = pl.pallas_call(
        _mlp_kernel,
        out_shape=jax.ShapeDtypeStruct((B_PAD, LANES), jnp.float32),
        in_specs=[
            pl.BlockSpec(memory_space=pltpu.MemorySpace.VMEM),  # x column (8,1)
            pl.BlockSpec(memory_space=pltpu.MemorySpace.VMEM),  # layer-1 params
            pl.BlockSpec(memory_space=pltpu.MemorySpace.SMEM),  # layer-2 scalars
        ],
        out_specs=pl.BlockSpec(memory_space=pltpu.MemorySpace.VMEM),
    )(x_p, w1b1, p2)

    return out_p[:B, :D_OUT]


def init_params(key):
    """Deterministic init mirroring nn.Linear's U(-1/sqrt(fan_in), 1/sqrt(fan_in))."""
    k1, k2, k3, k4 = jax.random.split(key, 4)
    bound1 = 1.0 / jnp.sqrt(jnp.float32(D_IN))
    bound2 = 1.0 / jnp.sqrt(jnp.float32(H))
    # Stored as [in, out] (transposed relative to PyTorch's [out, in]).
    w1 = jax.random.uniform(k1, (D_IN, H), jnp.float32, -bound1, bound1)
    b1 = jax.random.uniform(k2, (H,), jnp.float32, -bound1, bound1)
    w2 = jax.random.uniform(k3, (H, D_OUT), jnp.float32, -bound2, bound2)
    b2 = jax.random.uniform(k4, (D_OUT,), jnp.float32, -bound2, bound2)
    return w1, b1, w2, b2


def pack_params(w1, b1, w2, b2):
    """One-time packing/padding of parameters into kernel operands (hoisted)."""
    w1b1 = jnp.zeros((2, LANES), jnp.float32)
    w1b1 = w1b1.at[0, :H].set(w1[0, :])   # w1 row
    w1b1 = w1b1.at[1, :H].set(b1)         # b1 row
    p2 = jnp.concatenate([w2[:, 0], b2]).astype(jnp.float32)  # (3,)
    return w1b1, p2


if __name__ == "__main__":
    key = jax.random.PRNGKey(0)
    w1, b1, w2, b2 = init_params(key)
    w1b1, p2 = pack_params(w1, b1, w2, b2)  # padded once, outside the hot path

    # Small batch of D_in=1 inputs (includes the module's example x = [0.0]).
    x = jnp.array([[0.0], [1.0]], dtype=jnp.float32)  # (2, 1)

    y = net_forward(x, w1b1, p2)
    jax.block_until_ready(y)

    # Pure-JAX reference check.
    ref = jax.nn.sigmoid(jax.nn.sigmoid(x @ w1 + b1) @ w2 + b2)
    assert y.shape == (2, D_OUT)
    assert jnp.allclose(y, ref, atol=1e-6), (y, ref)

    print("KERNEL_OK")
</pallas_src>

<mosaic_0001>
module attributes {stable_mosaic.version = 11 : i64} {
  func.func @_mlp_kernel(%arg0: memref<8x1xf32, #tpu.memory_space<vmem>>, %arg1: memref<2x128xf32, #tpu.memory_space<vmem>>, %arg2: memref<3xf32, #tpu.memory_space<smem>>, %arg3: memref<8x128xf32, #tpu.memory_space<vmem>>) attributes {dimension_semantics = [], scalar_prefetch = 0 : i64, scratch_operands = 0 : i64, tpu.core_type = #tpu.core_type<tc>} {
    %c0 = arith.constant 0 : index
    %c0_0 = arith.constant 0 : index
    %0 = vector.load %arg0[%c0, %c0_0] : memref<8x1xf32, #tpu.memory_space<vmem>>, vector<8x1xf32>
    %c0_1 = arith.constant 0 : index
    %c0_2 = arith.constant 0 : index
    %1 = vector.load %arg1[%c0_1, %c0_2] : memref<2x128xf32, #tpu.memory_space<vmem>>, vector<1x128xf32>
    %c1 = arith.constant 1 : index
    %c0_3 = arith.constant 0 : index
    %2 = vector.load %arg1[%c1, %c0_3] : memref<2x128xf32, #tpu.memory_space<vmem>>, vector<1x128xf32>
    %3 = vector.broadcast %0 : vector<8x1xf32> to vector<8x128xf32>
    %4 = vector.broadcast %1 : vector<1x128xf32> to vector<8x128xf32>
    %5 = arith.mulf %3, %4 : vector<8x128xf32>
    %6 = vector.broadcast %2 : vector<1x128xf32> to vector<8x128xf32>
    %7 = arith.addf %5, %6 : vector<8x128xf32>
    %8 = arith.negf %7 : vector<8x128xf32>
    %9 = math.exp %8 : vector<8x128xf32>
    %cst = arith.constant 1.000000e+00 : f32
    %10 = vector.broadcast %cst : f32 to vector<8x128xf32>
    %11 = arith.addf %10, %9 : vector<8x128xf32>
    %12 = arith.divf %10, %11 : vector<8x128xf32>
    %c0_4 = arith.constant 0 : index
    %13 = memref.load %arg2[%c0_4] : memref<3xf32, #tpu.memory_space<smem>>
    %c1_5 = arith.constant 1 : index
    %14 = memref.load %arg2[%c1_5] : memref<3xf32, #tpu.memory_space<smem>>
    %c2 = arith.constant 2 : index
    %15 = memref.load %arg2[%c2] : memref<3xf32, #tpu.memory_space<smem>>
    %16 = vector.extract_strided_slice %12 {offsets = [0, 0], sizes = [8, 1], strides = [1, 1]} : vector<8x128xf32> to vector<8x1xf32>
    %17 = vector.broadcast %13 : f32 to vector<8x1xf32>
    %18 = arith.mulf %16, %17 : vector<8x1xf32>
    %19 = vector.extract_strided_slice %12 {offsets = [0, 1], sizes = [8, 1], strides = [1, 1]} : vector<8x128xf32> to vector<8x1xf32>
    %20 = vector.broadcast %14 : f32 to vector<8x1xf32>
    %21 = arith.mulf %19, %20 : vector<8x1xf32>
    %22 = arith.addf %18, %21 : vector<8x1xf32>
    %23 = vector.broadcast %15 : f32 to vector<8x1xf32>
    %24 = arith.addf %22, %23 : vector<8x1xf32>
    %25 = arith.negf %24 : vector<8x1xf32>
    %26 = math.exp %25 : vector<8x1xf32>
    %cst_6 = arith.constant 1.000000e+00 : f32
    %27 = vector.broadcast %cst_6 : f32 to vector<8x1xf32>
    %28 = arith.addf %27, %26 : vector<8x1xf32>
    %29 = arith.divf %27, %28 : vector<8x1xf32>
    %30 = vector.shape_cast %29 : vector<8x1xf32> to vector<8x1xf32>
    %31 = vector.broadcast %30 : vector<8x1xf32> to vector<8x128xf32>
    %c0_7 = arith.constant 0 : index
    %c0_8 = arith.constant 0 : index
    %32 = vector.load %arg3[%c0_7, %c0_8] : memref<8x128xf32, #tpu.memory_space<vmem>>, vector<8x128xf32>
    tpu.vector_store %arg3[%c0_7, %c0_8], %31 {strides = array<i32>} : memref<8x128xf32, #tpu.memory_space<vmem>>, vector<8x128xf32>,
    return
  }
}

</mosaic_0001>

<bundles_post_ra>
// kernel: net_forward.1
= control target key start
LH: loop header
LB: loop body
LE: loop exit
PB: predicated region body
PF: predicated region fallthrough
CT: control target
= control target key end

     0   :  { %8 = vsyncpa [#allocation3], 0  ;;  %s153_s0 = inlined_call_operand.vmem [shape: f32[8,1], index: 0, kind: input, shape index: {}]   ;;  %s154_s1 = inlined_call_operand.vmem [shape: f32[2,128], index: 1, kind: input, shape index: {}]   ;;  %s155_s2 = inlined_call_operand.vmem [shape: f32[3], index: 2, kind: input, shape index: {}]   ;;  %s156_s3 = inlined_call_operand.vmem [shape: f32[8,128], index: 3, kind: output, shape index: {}]  }
   0x1   :  { %s19_s14 = sshll.u32 %s155_s2, 4  ;;  %s20_s14 = int_to_ptr.vmem [resolvable:$true] %s19_s14 }
   0x2   :  { %s101_s15 = scalar_lea.vmem %s20_s14, 16  ;;  %p106_p1 = scmp.lt.s32.totalorder %s20_s14, %s20_s14 }
   0x3   :  { %p102_p0 = scmp.ne.s32.totalorder %s20_s14, %s101_s15  ;;  %p107_p2 = scmp.lt.s32.totalorder %s101_s15, %s101_s15 }
   0x5   :  { %p108_p3 = por %p107_p2, %p106_p1 }
   0x7   :  { %p109_p4 = pnand %p108_p3, %p102_p0 }
   0x9   :  { %112 = shalt.err (!%p109_p4)
}
   0xa   :  { %s115_s16 = smov [#allocation2]  }
   0xb   :  { %22 = dma.vmem_to_smem %s20_s14, 16, %s115_s16, [#allocation3]  }
   0xc   :  { %113 = dma.done.wait [#allocation3], 16  }
   0xd   :  { %114 = vsyncadd [#allocation3], 4294967280 }
   0xe   :  { %26 = sfence }
   0xf   :  { %v27_v0 = vld [vmem:[%s153_s0] sm:$0xff]  ;;  %v116_v1 = vmov 0   ;;  %s85_s0 = sld [smem:[#allocation2 + $0x1]]  ;;  %s117_s22 = smov 127  }
  0x10   :  { %91 = vset.pattern.permute.xlu0 %v116_v1  ;;  %92 = vset.pattern.permute.xlu1 %v116_v1  ;;  %v82_v2 = vld [vmem:[%s154_s1] ss:$0 sm:$0xff]  ;;  %v83_v3 = vld [vmem:[%s154_s1 + $0x1] ss:$0 sm:$0xff]  ;;  %s51_s23 = sld [smem:[#allocation2]] }
  0x11   :  { %32 = vperm.xlu0 %91, %v27_v0   ;;  %s86_s24 = sld [smem:[#allocation2 + $0x2]] }
  0x15   :  { %v56_v10 = vstv %s85_s0 }
  0x16   :  { %v54_v13 = vstv %s51_s23 }
  0x17   :  { %v63_v15 = vstv %s86_s24 }
  0x8c   :  { %v33_v4 = vpop.permute.xlu0 %32 }
  0x8d   :  { %v39_v5 = vmul.f32 %v82_v2, %v33_v4 }
  0x8f   :  { %v44_v6 = vadd.f32 %v83_v3, %v39_v5 }
  0x91   :  { %v84_v7 = vmul.f32 -1.442695, %v44_v6 }
  0x93   :  { %93 = vpow2.f32 %v84_v7 }
  0xa0   :  { %v94_v8 = vpop.eup %93 }
  0xa1   :  { %v48_v9 = vadd.f32 1.0, %v94_v8 }
  0xa3   :  { %95 = vrcp.f32 %v48_v9 }
  0xb0   :  { %v96_v11 = vpop.eup %95 }
  0xb1   :  { %v57_v12 = vmul.f32 %v96_v11, %v56_v10  ;;  %v55_v14 = vmul.f32 %v96_v11, %v54_v13 }
  0xb3   :  { %59 = vrot.lane.b32.xlu0 %v57_v12, %s117_s22 }
 0x125   :  { %v60_v16 = vpop.permute.xlu0 %59 }
 0x126   :  { %v62_v17 = vadd.f32 %v60_v16, %v55_v14 }
 0x128   :  { %v64_v18 = vadd.f32 %v63_v15, %v62_v17 }
 0x12a   :  { %v87_v19 = vmul.f32 -1.442695, %v64_v18 }
 0x12c   :  { %97 = vpow2.f32 %v87_v19 }
 0x139   :  { %v98_v20 = vpop.eup %97 }
 0x13a   :  { %v68_v21 = vadd.f32 1.0, %v98_v20 }
 0x13c   :  { %99 = vrcp.f32 %v68_v21 }
 0x149   :  { %v100_v22 = vpop.eup %99 }
 0x14a   :  { %73 = vperm.xlu1 %92, %v100_v22  }
 0x1c5   :  { %v74_v23 = vpop.permute.xlu1 %73 }
 0x1c6   :  { %76 = vst [vmem:[%s156_s3] sm:$0xff] %v74_v23 }
 0x1c7   :  { %81 = vsyncpa [#allocation3], 1 }

</bundles_post_ra>
